<compile_context>
chip_gen: v5e
topology: v5e:2x2
jax: 0.10.0
libtpu: 0.0.40
codegen_flags: <defaults>
</compile_context>

<pallas_src>
import functools

import jax
import jax.numpy as jnp
from jax.experimental import pallas as pl
from jax.experimental.pallas import tpu as pltpu


def _round_up(x, m):
    return (x + m - 1) // m * m


def _pick_row_tile(n):
    """Largest sublane-aligned divisor of n (amortizes ~0.35us per grid step).
    Allows t == n so e.g. N=256 uses a single 256-row tile."""
    for t in (256, 128, 64, 32, 16, 8):
        if t <= n and n % t == 0:
            return t
    return n


# ------------------------------ Pallas kernels --------------------------------
def _project_kernel(x_ref, w_ref, h_ref):
    """h_ext = x @ w_ext for one (batch, row-tile) block (MXU, f32 accumulation).
    w_ext carries the folded per-head attention vectors, so src/tgt attention
    scores come out of this single matmul as extra output columns."""
    h_ref[0] = jnp.dot(x_ref[0], w_ref[...],
                       preferred_element_type=jnp.float32).astype(h_ref.dtype)


def _attention_kernel(h_ref, st_ref, adj_ref, out_ref, *,
                      num_heads, out_features, apply_relu):
    """GAT attention + aggregation for one (batch, query-row-tile) block.

    h_ref   : (1, N, P_h)    projected block: cols [0:HD) head features,
                             [HD:HD+H) src scores, [HD+H:HD+2H) tgt scores, rest zero
    st_ref  : (1, H, N)      tgt scores pre-transposed in the wrapper (hoisted relayout)
    adj_ref : (1, TQ, N)     int8 adjacency rows for this query tile
    out_ref : (1, TQ, P_out) lane-dense (128-padded) concatenated head outputs
    """
    nh = num_heads
    d = out_features
    hd = nh * d
    tq = out_ref.shape[1]
    p_out = out_ref.shape[2]

    q = pl.program_id(1)
    row0 = pl.multiple_of(q * tq, tq)

    # Query rows sliced from the resident full-h block: no separate hq DMA stream.
    h_q = h_ref[0, pl.ds(row0, tq), :]                                    # (TQ, P_h)
    s_src_q = h_q[:, hd:hd + nh].astype(jnp.float32)                      # (TQ, H)

    h_all = h_ref[0]                                                      # (N, P_h)
    h_feat = h_all if p_out == h_all.shape[1] else h_all[:, :p_out]       # (N, P_out), lane-tile aligned
    s_tgt_t = st_ref[0].astype(jnp.float32)                               # (H, N)

    # Additive mask bias computed once per tile, shared by all heads.
    # Large-finite (not -inf) so fully-masked rows stay finite instead of NaN.
    adj_f = adj_ref[0].astype(jnp.float32)                                # (TQ, N)
    bias = jnp.where(adj_f != 0.0, jnp.float32(0.0), jnp.float32(-1e30))

    lane = jax.lax.broadcasted_iota(jnp.int32, (1, p_out), 1)             # output column index
    acc = jnp.zeros((tq, p_out), jnp.float32)

    # Static unroll over heads (H small); each head's (TQ,N) intermediates are
    # consumed immediately into the lane-dense accumulator.
    # TODO(synk): for very large N convert to lax.fori_loop(..., unroll=True)
    #             to structurally bound the number of live (TQ, N) intermediates.
    for head in range(nh):
        scores = s_src_q[:, head:head + 1] + s_tgt_t[head:head + 1, :]    # (TQ, N)
        scores = jnp.where(scores > 0, scores, 0.2 * scores)              # LeakyReLU(0.2)
        scores = scores + bias

        m = jnp.max(scores, axis=1, keepdims=True)                        # (TQ, 1)
        p = jnp.exp(scores - m)                                           # (TQ, N)
        denom = jnp.sum(p, axis=1, keepdims=True)                         # (TQ, 1)

        # Lane-dense aggregation: with P_out <= 128 this costs the same MXU passes
        # as a narrow (N, D) matmul, and avoids per-head column-slice / concat relayouts.
        agg = jnp.dot(p.astype(h_feat.dtype), h_feat,
                      preferred_element_type=jnp.float32)                 # (TQ, P_out)
        agg = agg * pl.reciprocal(denom, approx=True)                     # normalize after aggregation

        head_mask = (lane >= head * d) & (lane < (head + 1) * d)          # (1, P_out)
        acc = acc + jnp.where(head_mask, agg, jnp.float32(0.0))

    if apply_relu:
        acc = jnp.maximum(acc, 0.0)
    out_ref[0] = acc.astype(out_ref.dtype)        # single lane-dense (128-aligned) store


# ------------------------------ Wrappers ---------------------------------------
def _project(x, w_ext, *, tile_rows):
    B, N, p_in = x.shape
    p_h = w_ext.shape[1]
    return pl.pallas_call(
        _project_kernel,
        out_shape=jax.ShapeDtypeStruct((B, N, p_h), x.dtype),
        grid=(B, N // tile_rows),
        in_specs=[
            pl.BlockSpec((1, tile_rows, p_in), lambda b, q: (b, q, 0)),
            pl.BlockSpec((p_in, p_h), lambda b, q: (0, 0)),
        ],
        out_specs=pl.BlockSpec((1, tile_rows, p_h), lambda b, q: (b, q, 0)),
        compiler_params=pltpu.CompilerParams(
            dimension_semantics=("parallel", "parallel"),
            vmem_limit_bytes=32 * 1024 * 1024),
    )(x, w_ext)


def gat_layer(x, adj_i8, w, a_src, a_tgt, *, num_heads, out_features, apply_relu,
              compute_dtype=jnp.float32, out_dtype=jnp.float32, tile_q=None):
    B, N, p_in = x.shape
    H, D = num_heads, out_features
    HD = H * D
    p_h = _round_up(HD + 2 * H, 128)      # projected width: features + src/tgt scores, 128-padded
    p_out = _round_up(HD, 128)            # lane-dense output width (stripped after last layer)
    TQ = _pick_row_tile(N) if tile_q is None else tile_q
    assert N % TQ == 0

    f_in = w.shape[0]
    assert p_in >= f_in

    # Fold per-head attention vectors into the projection weight: the src/tgt scores
    # ride in otherwise-unused lanes of the projection matmul output (essentially free).
    w_hd = w.reshape(f_in, H, D)
    w_src = jnp.einsum("fhd,hd->fh", w_hd, a_src)                  # (f_in, H)
    w_tgt = jnp.einsum("fhd,hd->fh", w_hd, a_tgt)                  # (f_in, H)
    w_ext = jnp.zeros((p_in, p_h), jnp.float32)
    w_ext = w_ext.at[:f_in, :HD].set(w)
    w_ext = w_ext.at[:f_in, HD:HD + H].set(w_src)
    w_ext = w_ext.at[:f_in, HD + H:HD + 2 * H].set(w_tgt)
    w_ext = w_ext.astype(compute_dtype)

    h_ext = _project(x.astype(compute_dtype), w_ext, tile_rows=TQ)  # (B, N, P_h)

    # Hoisted relayout: one tiny (B,N,H)->(B,H,N) transpose per layer (XLA prologue)
    # instead of H per-tile column->row reshapes inside the kernel.
    s_tgt_t = jnp.swapaxes(h_ext[:, :, HD + H:HD + 2 * H], 1, 2).astype(jnp.float32)  # (B, H, N)

    kernel = functools.partial(_attention_kernel, num_heads=H,
                               out_features=D, apply_relu=apply_relu)
    return pl.pallas_call(
        kernel,
        out_shape=jax.ShapeDtypeStruct((B, N, p_out), out_dtype),
        grid=(B, N // TQ),
        in_specs=[
            pl.BlockSpec((1, N, p_h), lambda b, q: (b, 0, 0)),      # full h, resident across q
            pl.BlockSpec((1, H, N), lambda b, q: (b, 0, 0)),        # transposed tgt scores
            pl.BlockSpec((1, TQ, N), lambda b, q: (b, q, 0)),       # int8 adjacency rows
        ],
        out_specs=pl.BlockSpec((1, TQ, p_out), lambda b, q: (b, q, 0)),
        compiler_params=pltpu.CompilerParams(
            dimension_semantics=("parallel", "parallel"),
            # TODO(synk): on v7x (64 MiB physical VMEM) at N >= ~8K, cap TQ at 128
            #             and retune this budget per deployment.
            vmem_limit_bytes=32 * 1024 * 1024),
    )(h_ext, s_tgt_t, adj_i8)


# ------------------------------ Parameter setup --------------------------------
def init_gat_params(key, in_features, hidden_features, out_features,
                    num_heads, num_layers):
    """Deterministic synthetic parameters (shapes follow the PyTorch module)."""
    dims = [(in_features, hidden_features)]
    for _ in range(num_layers - 2):
        dims.append((num_heads * hidden_features, hidden_features))
    dims.append((num_heads * hidden_features, out_features))

    params = []
    for (f_in, f_out) in dims:
        key, k1, k2, k3 = jax.random.split(key, 4)
        bound_w = (6.0 / (f_in + num_heads * f_out)) ** 0.5
        w = jax.random.uniform(k1, (f_in, num_heads * f_out),
                               minval=-bound_w, maxval=bound_w, dtype=jnp.float32)
        bound_a = (6.0 / (1 + 2 * f_out)) ** 0.5
        a_src = jax.random.uniform(k2, (num_heads, f_out),
                                   minval=-bound_a, maxval=bound_a, dtype=jnp.float32)
        a_tgt = jax.random.uniform(k3, (num_heads, f_out),
                                   minval=-bound_a, maxval=bound_a, dtype=jnp.float32)
        params.append(dict(w=w, a_src=a_src, a_tgt=a_tgt, out_features=f_out))
    return params


def gat_forward(params, x, adj, num_heads, compute_dtype=jnp.float32):
    adj_i8 = (adj != 0).astype(jnp.int8)     # 4x less adjacency HBM traffic / VMEM than f32
    n_layers = len(params)
    h = x
    for i, p in enumerate(params):
        last = (i == n_layers - 1)
        h = gat_layer(h, adj_i8, p["w"], p["a_src"], p["a_tgt"],
                      num_heads=num_heads,
                      out_features=p["out_features"],
                      apply_relu=not last,                         # F.relu between layers
                      compute_dtype=compute_dtype,
                      out_dtype=jnp.float32 if last else compute_dtype)
    return h[..., :num_heads * params[-1]["out_features"]]         # strip lane padding


# ------------------------------ Pure-JAX reference ------------------------------
def gat_layer_ref(x, adj, w, a_src, a_tgt, num_heads, out_features, apply_relu):
    B, N, _ = x.shape
    h = jnp.einsum("bnf,fk->bnk", x, w)
    h = h.reshape(B, N, num_heads, out_features).transpose(0, 2, 1, 3)   # (B,H,N,D)
    s_src = jnp.einsum("bhnd,hd->bhn", h, a_src)[..., :, None]           # (B,H,N,1)
    s_tgt = jnp.einsum("bhnd,hd->bhn", h, a_tgt)[..., None, :]           # (B,H,1,N)
    scores = s_src + s_tgt
    scores = jnp.where(scores > 0, scores, 0.2 * scores)
    mask = (adj != 0.0)[:, None, :, :]
    scores = jnp.where(mask, scores, -jnp.inf)
    attn = jax.nn.softmax(scores, axis=-1)
    hp = jnp.einsum("bhij,bhjd->bhid", attn, h)
    hp = hp.transpose(0, 2, 1, 3).reshape(B, N, num_heads * out_features)
    return jnp.maximum(hp, 0.0) if apply_relu else hp


def gat_forward_ref(params, x, adj, num_heads):
    n_layers = len(params)
    for i, p in enumerate(params):
        last = (i == n_layers - 1)
        x = gat_layer_ref(x, adj, p["w"], p["a_src"], p["a_tgt"],
                          num_heads, p["out_features"], not last)
    return x


# ----------------------------------- Main ---------------------------------------
if __name__ == "__main__":
    B, N = 2, 16
    in_features, hidden_features, out_features = 8, 16, 8
    num_heads, num_layers = 4, 3

    key = jax.random.PRNGKey(0)
    k_x, k_adj, k_p = jax.random.split(key, 3)

    x = jax.random.normal(k_x, (B, N, in_features), dtype=jnp.float32)
    # random 0/1 adjacency with guaranteed self-loops (avoids fully-masked rows)
    adj = (jax.random.uniform(k_adj, (B, N, N)) > 0.5).astype(jnp.float32)
    adj = jnp.maximum(adj, jnp.eye(N, dtype=jnp.float32)[None, :, :])

    params = init_gat_params(k_p, in_features, hidden_features, out_features,
                             num_heads, num_layers)

    # f32 path: checked tightly against the pure-JAX reference.
    out = gat_forward(params, x, adj, num_heads)
    out = jax.block_until_ready(out)

    ref = gat_forward_ref(params, x, adj, num_heads)
    assert out.shape == (B, N, num_heads * out_features)
    assert jnp.allclose(out, ref, atol=2e-3, rtol=2e-3), "mismatch vs JAX reference"

    # bf16 compute path (recommended default for v6e/v7x MXU): exercised for a clean run.
    out_bf16 = gat_forward(params, x, adj, num_heads, compute_dtype=jnp.bfloat16)
    out_bf16 = jax.block_until_ready(out_bf16)
    assert out_bf16.shape == out.shape
    assert bool(jnp.all(jnp.isfinite(out_bf16)))

    print("KERNEL_OK")
</pallas_src>

<mosaic_0001>
module attributes {stable_mosaic.version = 11 : i64} {
  func.func @_project_kernel(%arg0: i32, %arg1: i32, %arg2: memref<1x16x8xf32, #tpu.memory_space<vmem>>, %arg3: memref<8x128xf32, #tpu.memory_space<vmem>>, %arg4: memref<1x16x128xf32, #tpu.memory_space<vmem>>) attributes {dimension_semantics = [#tpu.dimension_semantics<parallel>, #tpu.dimension_semantics<parallel>], iteration_bounds = array<i64: 2, 1>, scalar_prefetch = 0 : i64, scratch_operands = 0 : i64, tpu.core_type = #tpu.core_type<tc>, window_params = [{transform_indices = @transform_0, window_bounds = array<i64: 1, 16, 8>}, {pipeline_mode = #tpu.pipeline_mode<synchronous>, transform_indices = @transform_1, window_bounds = array<i64: 8, 128>}, {transform_indices = @transform_2, window_bounds = array<i64: 1, 16, 128>}]} {
    %c0 = arith.constant 0 : index
    %c0_0 = arith.constant 0 : index
    %c0_1 = arith.constant 0 : index
    %0 = vector.load %arg2[%c0, %c0_0, %c0_1] : memref<1x16x8xf32, #tpu.memory_space<vmem>>, vector<1x16x8xf32>
    %1 = vector.shape_cast %0 : vector<1x16x8xf32> to vector<16x8xf32>
    %c0_2 = arith.constant 0 : index
    %c0_3 = arith.constant 0 : index
    %2 = vector.load %arg3[%c0_2, %c0_3] : memref<8x128xf32, #tpu.memory_space<vmem>>, vector<8x128xf32>
    %cst = arith.constant dense<0.000000e+00> : vector<16x128xf32>
    %3 = tpu.matmul %1, %2, %cst {dimension_numbers = #tpu.dot_dimension_numbers<[1], [0], [0], [1], [0, 0, 1, 1], [], []>} : vector<16x8xf32>, vector<8x128xf32>, vector<16x128xf32> -> vector<16x128xf32>
    %c0_4 = arith.constant 0 : index
    %c0_5 = arith.constant 0 : index
    %c0_6 = arith.constant 0 : index
    %4 = vector.load %arg4[%c0_4, %c0_5, %c0_6] : memref<1x16x128xf32, #tpu.memory_space<vmem>>, vector<1x16x128xf32>
    %5 = vector.shape_cast %4 : vector<1x16x128xf32> to vector<16x128xf32>
    %6 = vector.shape_cast %3 : vector<16x128xf32> to vector<1x16x128xf32>
    tpu.vector_store %arg4[%c0_4, %c0_5, %c0_6], %6 {strides = array<i32>} : memref<1x16x128xf32, #tpu.memory_space<vmem>>, vector<1x16x128xf32>,
    return
  }
  func.func @transform_0(%arg0: i32, %arg1: i32) -> (i32, i32, i32) {
    %c0_i32 = arith.constant 0 : i32
    %c0_i32_0 = arith.constant 0 : i32
    return %arg0, %arg1, %c0_i32 : i32, i32, i32
  }
  func.func @transform_1(%arg0: i32, %arg1: i32) -> (i32, i32) {
    %c0_i32 = arith.constant 0 : i32
    %c0_i32_0 = arith.constant 0 : i32
    %c0_i32_1 = arith.constant 0 : i32
    return %c0_i32, %c0_i32_0 : i32, i32
  }
  func.func @transform_2(%arg0: i32, %arg1: i32) -> (i32, i32, i32) {
    %c0_i32 = arith.constant 0 : i32
    %c0_i32_0 = arith.constant 0 : i32
    return %arg0, %arg1, %c0_i32 : i32, i32, i32
  }
}

</mosaic_0001>

<bundles_post_ra>
// kernel: tpu_custom_call.1
= control target key start
LH: loop header
LB: loop body
LE: loop exit
PB: predicated region body
PF: predicated region fallthrough
CT: control target
= control target key end

     0   :  { %7 = vsyncpa [#allocation3], 0  ;;  %s577_s0 = inlined_call_operand.vmem [shape: f32[2,16,8], index: 0, kind: input, shape index: {}]   ;;  %s578_s1 = inlined_call_operand.vmem [shape: f32[8,128], index: 1, kind: input, shape index: {}]   ;;  %s579_s2 = inlined_call_operand.hbm [shape: f32[2,16,128], index: 2, kind: output, shape index: {}]  }
   0x1   :  { %9 = vsyncpa [#allocation3 + $0x1], 0  ;;  %s477_s9 = smov 0   ;;  %s479_s10 = smov 0  }
   0x2   :  { %s481_s11 = smov 0   ;;  %s483_s12 = smov 0  }
   0x3   :  { %s485_s13 = smov 0   ;;  %s487_s14 = smov 0  }
   0x4 LB: > { %s305_s15 = sadd.s32 4294967295, %s458_s14   ;;  %s306_s16 = sadd.s32 4294967294, %s458_s14   ;;  %s458_s14 = sphi %s487_s14, %s15_s14   ;;  %s454_s13 = sphi %s485_s13, %s586_s13   ;;  %s450_s12 = sphi %s483_s12, %s585_s12   ;;  %s446_s11 = sphi %s481_s11, %s584_s11   ;;  %s442_s10 = sphi %s479_s10, %s583_s10   ;;  %s438_s9 = sphi %s477_s9, %s582_s9  }
   0x5   : > { %s27_s17 = sadd.s32 1, %s454_s13  ;;  %s85_s18 = sadd.s32 1, %s446_s11 }
   0x6   : > { %p29_p0 = scmp.ge.s32.totalorder %s27_s17, 2  ;;  %p95_p1 = scmp.ne.s32.totalorder %s446_s11, %s442_s10 }
   0x7   : > { %p96_p2 = scmp.eq.s32.totalorder %s305_s15, 1  ;;  %p101_p3 = scmp.ne.s32.totalorder %s442_s10, %s438_s9 }
   0x8   : > { %s588_s17 = smov (%p29_p0, %s27_s17), 0  ;;  %p102_p5 = scmp.eq.s32.totalorder %s306_s16, 1 }
   0x9   : > { %p517_p4 = por %p96_p2, %p95_p1  ;;  %s80_s20 = ssub.s32 %s454_s13, %s588_s17 }
   0xa   : > { %p309_p6 = scmp.ge.s32.totalorder %s458_s14, 1  ;;  %p83_p7 = scmp.eq.s32.totalorder %s80_s20, 0 }
   0xb   : > { %p524_p8 = por %p102_p5, %p101_p3  ;;  %p136_p9 = scmp.lt.s32.totalorder %s458_s14, 3 }
   0xc   : > { %s530_s22 = scalar_select %p83_p7, %s446_s11, %s85_s18  }
   0xd   : > { %p137_p10 = pnand %p309_p6, %p136_p9 }
   0xe   : > { %p163_p11 = scmp.lt.s32.totalorder (!%p137_p10), %s450_s12, 1  ;;  %s159_s30 = sand.u32 (!%p137_p10), 1, %s442_s10  }
   0xf   : > { %140 = sbr.rel (%p137_p10) target bundleno = 156 (0x9c), region = 28  ;;  %s310_s3 = sshll.u32 (!%p137_p10), %s159_s30, 4 }
  0x10   : > { %s321_s4 = sshll.u32 (!%p137_p10), %s450_s12, 4  ;;  %s161_s8 = scalar_lea.vmem (!%p137_p10), [#allocation2], %s310_s3 }
  0x11   : > { %s222_s7 = scalar_lea.hbm (!%p137_p10), %s579_s2, %s321_s4  ;;  %s223_s15 = sshll.u32 (!%p137_p10), %s161_s8, 4  ;;  %s224_s15 = int_to_ptr.vmem [resolvable:$true] %s223_s15 }
  0x12   : > { %s225_s16 = sshll.u32 (!%p137_p10), %s222_s7, 4  ;;  %s209_s18 = scalar_lea.sflag (!%p137_p10), [#allocation3], %s159_s30  ;;  %s226_s16 = int_to_ptr.hbm [resolvable:$true] %s225_s16 }
  0x13   : > { %s394_s20 = sshra.s32 (!%p137_p10), %s226_s16, 4  ;;  %s395_s20 = int_to_ptr.hbm [resolvable:$true] %s394_s20 }
  0x14   : > { %v175_v0 = vld [vmem:[%s578_s1] sm:$0xff]  ;;  %s164_s25 = scalar_select %p163_p11, %s450_s12, 1  ;;  %vm176_vm0 = vcmask 64512  }
  0x15   : > { %198 = vmatpush.msra.mxu0 %v175_v0  ;;  %322 = vmatpush.msra.mxu1 %v175_v0  ;;  %s396_s23 = scalar_lea.hbm %s395_s20, 16  ;;  %p401_p1 = scmp.lt.s32.totalorder %s395_s20, %s579_s2 }
  0x16   : > { %s320_s26 = sshll.u32 %s164_s25, 4  ;;  %p397_p12 = scmp.ne.s32.totalorder %s395_s20, %s396_s23 }
  0x17   : > { %s170_s29 = scalar_lea.vmem %s577_s0, %s320_s26  ;;  %s400_s25 = scalar_lea.hbm %s579_s2, 32 }
  0x18   : > { %v173_v1 = vld [vmem:[%s170_s29] sm:$0xff]  ;;  %v174_v2 = vld [vmem:[%s170_s29 + $0x8] sm:$0xff]  ;;  %p398_p13 = pnand %p397_p12, %p517_p4  ;;  %p402_p2 = scmp.lt.s32.totalorder %s400_s25, %s396_s23 }
  0x19   : > { %313 = vmatmul.msk.f32.vlgmr.msra.gmra.mxu0 %vm176_vm0, %v173_v1  ;;  %314 = vmatmul.msk.f32.vlgmr.msra.gmra.mxu1 %vm176_vm0, %v174_v2 }
  0x1a   : > { %p399_p0 = pneg %p398_p13  ;;  %p403_p3 = por %p402_p2, %p401_p1 }
  0x1c   : > { %p404_p5 = pnand %p403_p3, %p399_p0 }
  0x96   : > { %v200_v3 = vpop.f32.mrf.mxu0  ;;  %v203_v4 = vpop.f32.mrf.mxu1 }
  0x97   : > { %206 = vst [vmem:[%s161_s8] sm:$0xff] %v200_v3 }
  0x98   : > { %207 = vst [vmem:[%s161_s8 + $0x8] sm:$0xff] %v203_v4 }
  0x99   : > { %407 = shalt.err (!%p404_p5)
}
  0x9a   : > { %s460_s28 = smov 128   ;;  %s461_s29 = smov 8  }
  0x9b   : > { %323 = dma.vmem_to_hbm [thread:$0]  (%p517_p4), %s224_s15, 256, %s226_s16, %s209_s18, %s460_s28, %s460_s28, %s461_s29  }
  0x9c PF: > { %p329_p6 = scmp.ge.s32.totalorder %s458_s14, 2  ;;  %s240_s30 = sand.u32 1, %s438_s9  }
  0x9d   : > { %s241_s3 = scalar_lea.sflag [#allocation3], %s240_s30 }
  0x9e   : > { %p326_p7 = pnand %p329_p6, %p524_p8 }
  0xa0   : > { %p327_p9 = pneg %p326_p7 }
  0xa2   : > { %433 = dma.done.wait (%p327_p9), %s241_s3, 256  }
  0xa3   : > { %435 = vsyncadd (%p327_p9), %s241_s3, 4294967040  ;;  %s15_s14 = sadd.s32 1, %s458_s14   ;;  %s582_s9 = smov %s442_s10 }
  0xa4   : > { %p12_p10 = scmp.ge.s32.totalorder %s15_s14, 4   ;;  %s583_s10 = smov %s446_s11 }
  0xa5   : > { %s584_s11 = smov %s530_s22  ;;  %s585_s12 = smov %s454_s13 }
  0xa6   : > { %s586_s13 = smov %s588_s17  ;;  %14 = sbr.rel (!%p12_p10) target bundleno = 4 (0x4), region = 63 }
  0xab   :  { %247 = vsyncpa [#allocation3], 1 }
  0xac   :  { %249 = vsyncpa [#allocation3 + $0x1], 1 }

</bundles_post_ra>
